<compile_context>
chip_gen: v7x
topology: tpu7x:2x2x1
jax: 0.10.0
libtpu: 0.0.40
codegen_flags: <defaults>
</compile_context>

<pallas_src>
import jax
import jax.numpy as jnp
from jax.experimental import pallas as pl
from jax.experimental.pallas import tpu as pltpu

IMG_SHAPE = (1, 28, 28)
IN_DIM = 1 * 28 * 28          # 784
H1 = 512
H2 = 256
OUT = 1
TB_MAX = 1024                 # max batch-tile rows per grid step
NEG_SLOPE = 0.2


def _round_up(x, m):
    return ((x + m - 1) // m) * m


def _leaky_relu(x, slope=NEG_SLOPE):
    # For 0 < slope < 1, max(x, slope*x) == LeakyReLU(x); cheaper than where().
    return jnp.maximum(x, slope * x)


def discriminator_kernel(x_ref, w1_ref, b1_ref, w2_ref, b2_ref, w3_ref, b3_ref,
                         o_ref):
    # x_ref: (TB, 784) f32; w1: (784, 512) bf16; w2: (512, 256) bf16;
    # biases f32 (1, out); w3_ref: (1, 256) f32 row; o_ref: (TB, 1) f32.
    x = x_ref[...].astype(jnp.bfloat16)      # in-register cast; no extra HBM pass

    h1 = jnp.dot(x, w1_ref[...], preferred_element_type=jnp.float32)
    h1 = _leaky_relu(h1 + b1_ref[...])

    h2 = jnp.dot(h1.astype(jnp.bfloat16), w2_ref[...],
                 preferred_element_type=jnp.float32)
    h2 = _leaky_relu(h2 + b2_ref[...])

    # Layer 3 has N=1: VPU multiply + lane reduce instead of a 1-column matmul.
    h3 = jnp.sum(h2 * w3_ref[...], axis=-1, keepdims=True) + b3_ref[...]

    o_ref[...] = jax.nn.sigmoid(h3)


def _choose_tiling(B):
    """Balanced batch tiles, multiple of 16, >=2 grid steps whenever B > 16."""
    num_tiles_target = max(2, pl.cdiv(B, TB_MAX))
    tb = _round_up(pl.cdiv(B, num_tiles_target), 16)
    grid0 = pl.cdiv(B, tb)          # actual number of (possibly partial) tiles
    return tb, grid0


def discriminator_forward(img, params, state=None):
    """img: (B, 1, 28, 28) float32 (NCHW). Returns (B, 1) validity in [0,1]."""
    del state  # unused, matches the PyTorch forward signature
    w1, b1, w2, b2, w3, b3 = params
    B = img.shape[0]

    # Flatten exactly like torch's img.view(B, -1); no pad, no cast pass.
    x = img.reshape(B, IN_DIM).astype(jnp.float32)

    TB, grid0 = _choose_tiling(B)
    B_pad = grid0 * TB              # output rows (last input tile may be partial)

    # Resident operands: bf16 matmul weights (f32 accumulation in-kernel),
    # f32 biases / layer-3 row. Cast once per call; not part of the batch stream.
    w1_bf = w1.astype(jnp.bfloat16)                 # (784, 512)
    w2_bf = w2.astype(jnp.bfloat16)                 # (512, 256)
    b1_r = b1.reshape(1, H1).astype(jnp.float32)
    b2_r = b2.reshape(1, H2).astype(jnp.float32)
    w3_r = w3.reshape(1, H2).astype(jnp.float32)
    b3_r = b3.reshape(1, OUT).astype(jnp.float32)

    out = pl.pallas_call(
        discriminator_kernel,
        out_shape=jax.ShapeDtypeStruct((B_pad, OUT), jnp.float32),
        grid=(grid0,),
        in_specs=[
            pl.BlockSpec((TB, IN_DIM), lambda i: (i, 0)),   # x: batch-tiled
            pl.BlockSpec((IN_DIM, H1), lambda i: (0, 0)),   # w1: resident
            pl.BlockSpec((1, H1), lambda i: (0, 0)),        # b1: resident
            pl.BlockSpec((H1, H2), lambda i: (0, 0)),       # w2: resident
            pl.BlockSpec((1, H2), lambda i: (0, 0)),        # b2: resident
            pl.BlockSpec((1, H2), lambda i: (0, 0)),        # w3 row: resident
            pl.BlockSpec((1, OUT), lambda i: (0, 0)),       # b3: resident
        ],
        out_specs=pl.BlockSpec((TB, OUT), lambda i: (i, 0)),
        compiler_params=pltpu.CompilerParams(
            dimension_semantics=("parallel",)),
    )(x, w1_bf, b1_r, w2_bf, b2_r, w3_r, b3_r)

    return out[:B]


def init_params(key):
    """Deterministic init mirroring torch.nn.Linear default
    (U[-1/sqrt(in), 1/sqrt(in)]). Weights stored as (in_features, out_features)."""
    def linear(key, fan_in, fan_out):
        kw, kb = jax.random.split(key)
        bound = 1.0 / jnp.sqrt(fan_in)
        w = jax.random.uniform(kw, (fan_in, fan_out), jnp.float32, -bound, bound)
        b = jax.random.uniform(kb, (1, fan_out), jnp.float32, -bound, bound)
        return w, b

    k1, k2, k3 = jax.random.split(key, 3)
    w1, b1 = linear(k1, IN_DIM, H1)
    w2, b2 = linear(k2, H1, H2)
    w3, b3 = linear(k3, H2, OUT)
    return (w1, b1, w2, b2, w3, b3)


def reference_forward(img, params):
    """Pure-JAX f32 reference for sanity checking."""
    w1, b1, w2, b2, w3, b3 = params
    x = img.reshape(img.shape[0], -1).astype(jnp.float32)
    h = jnp.where(x @ w1 + b1 > 0, x @ w1 + b1, NEG_SLOPE * (x @ w1 + b1))
    h2 = h @ w2 + b2
    h2 = jnp.where(h2 > 0, h2, NEG_SLOPE * h2)
    return jax.nn.sigmoid(h2 @ w3 + b3)


if __name__ == "__main__":
    key = jax.random.PRNGKey(0)
    k_img, k_param = jax.random.split(key)

    B = 8
    img = jax.random.normal(k_img, (B,) + IMG_SHAPE, dtype=jnp.float32)
    params = init_params(k_param)

    out = discriminator_forward(img, params)
    out = jax.block_until_ready(out)

    ref = reference_forward(img, params)
    assert out.shape == (B, 1)
    # bf16 matmul inputs (f32 accumulation) -> loosened tolerance vs f32 ref.
    assert jnp.allclose(out, ref, atol=2e-2, rtol=2e-2)

    print("KERNEL_OK")
</pallas_src>

<mosaic_0001>
module attributes {stable_mosaic.version = 11 : i64} {
  func.func @discriminator_kernel(%arg0: i32, %arg1: memref<16x784xf32, #tpu.memory_space<vmem>>, %arg2: memref<784x512xbf16, #tpu.memory_space<vmem>>, %arg3: memref<1x512xf32, #tpu.memory_space<vmem>>, %arg4: memref<512x256xbf16, #tpu.memory_space<vmem>>, %arg5: memref<1x256xf32, #tpu.memory_space<vmem>>, %arg6: memref<1x256xf32, #tpu.memory_space<vmem>>, %arg7: memref<1x1xf32, #tpu.memory_space<vmem>>, %arg8: memref<16x1xf32, #tpu.memory_space<vmem>>) attributes {dimension_semantics = [#tpu.dimension_semantics<parallel>], iteration_bounds = array<i64: 1>, scalar_prefetch = 0 : i64, scratch_operands = 0 : i64, tpu.core_type = #tpu.core_type<tc>, window_params = [{transform_indices = @transform_0, window_bounds = array<i64: 16, 784>}, {pipeline_mode = #tpu.pipeline_mode<synchronous>, transform_indices = @transform_1, window_bounds = array<i64: 784, 512>}, {pipeline_mode = #tpu.pipeline_mode<synchronous>, transform_indices = @transform_2, window_bounds = array<i64: 1, 512>}, {pipeline_mode = #tpu.pipeline_mode<synchronous>, transform_indices = @transform_3, window_bounds = array<i64: 512, 256>}, {pipeline_mode = #tpu.pipeline_mode<synchronous>, transform_indices = @transform_4, window_bounds = array<i64: 1, 256>}, {pipeline_mode = #tpu.pipeline_mode<synchronous>, transform_indices = @transform_5, window_bounds = array<i64: 1, 256>}, {pipeline_mode = #tpu.pipeline_mode<synchronous>, transform_indices = @transform_6, window_bounds = array<i64: 1, 1>}, {transform_indices = @transform_7, window_bounds = array<i64: 16, 1>}]} {
    %c0 = arith.constant 0 : index
    %c0_0 = arith.constant 0 : index
    %0 = vector.load %arg1[%c0, %c0_0] : memref<16x784xf32, #tpu.memory_space<vmem>>, vector<16x784xf32>
    %1 = arith.truncf %0 : vector<16x784xf32> to vector<16x784xbf16>
    %c0_1 = arith.constant 0 : index
    %c0_2 = arith.constant 0 : index
    %2 = vector.load %arg2[%c0_1, %c0_2] : memref<784x512xbf16, #tpu.memory_space<vmem>>, vector<784x512xbf16>
    %cst = arith.constant dense<0.000000e+00> : vector<16x512xf32>
    %3 = tpu.matmul %1, %2, %cst {dimension_numbers = #tpu.dot_dimension_numbers<[1], [0], [0], [1], [0, 0, 1, 1], [], []>} : vector<16x784xbf16>, vector<784x512xbf16>, vector<16x512xf32> -> vector<16x512xf32>
    %c0_3 = arith.constant 0 : index
    %c0_4 = arith.constant 0 : index
    %4 = vector.load %arg3[%c0_3, %c0_4] : memref<1x512xf32, #tpu.memory_space<vmem>>, vector<1x512xf32>
    %5 = vector.broadcast %4 : vector<1x512xf32> to vector<16x512xf32>
    %6 = arith.addf %3, %5 : vector<16x512xf32>
    %cst_5 = arith.constant 2.000000e-01 : f32
    %7 = vector.broadcast %cst_5 : f32 to vector<16x512xf32>
    %8 = arith.mulf %7, %6 : vector<16x512xf32>
    %9 = arith.maximumf %6, %8 : vector<16x512xf32>
    %10 = arith.truncf %9 : vector<16x512xf32> to vector<16x512xbf16>
    %c0_6 = arith.constant 0 : index
    %c0_7 = arith.constant 0 : index
    %11 = vector.load %arg4[%c0_6, %c0_7] : memref<512x256xbf16, #tpu.memory_space<vmem>>, vector<512x256xbf16>
    %cst_8 = arith.constant dense<0.000000e+00> : vector<16x256xf32>
    %12 = tpu.matmul %10, %11, %cst_8 {dimension_numbers = #tpu.dot_dimension_numbers<[1], [0], [0], [1], [0, 0, 1, 1], [], []>} : vector<16x512xbf16>, vector<512x256xbf16>, vector<16x256xf32> -> vector<16x256xf32>
    %c0_9 = arith.constant 0 : index
    %c0_10 = arith.constant 0 : index
    %13 = vector.load %arg5[%c0_9, %c0_10] : memref<1x256xf32, #tpu.memory_space<vmem>>, vector<1x256xf32>
    %14 = vector.broadcast %13 : vector<1x256xf32> to vector<16x256xf32>
    %15 = arith.addf %12, %14 : vector<16x256xf32>
    %cst_11 = arith.constant 2.000000e-01 : f32
    %16 = vector.broadcast %cst_11 : f32 to vector<16x256xf32>
    %17 = arith.mulf %16, %15 : vector<16x256xf32>
    %18 = arith.maximumf %15, %17 : vector<16x256xf32>
    %c0_12 = arith.constant 0 : index
    %c0_13 = arith.constant 0 : index
    %19 = vector.load %arg6[%c0_12, %c0_13] : memref<1x256xf32, #tpu.memory_space<vmem>>, vector<1x256xf32>
    %20 = vector.broadcast %19 : vector<1x256xf32> to vector<16x256xf32>
    %21 = arith.mulf %18, %20 : vector<16x256xf32>
    %cst_14 = arith.constant dense<0.000000e+00> : vector<16xf32>
    %22 = vector.multi_reduction <add>, %21, %cst_14 [1] : vector<16x256xf32> to vector<16xf32>
    %23 = vector.shape_cast %22 : vector<16xf32> to vector<16x1xf32>
    %c0_15 = arith.constant 0 : index
    %c0_16 = arith.constant 0 : index
    %24 = vector.load %arg7[%c0_15, %c0_16] : memref<1x1xf32, #tpu.memory_space<vmem>>, vector<1x1xf32>
    %25 = vector.broadcast %24 : vector<1x1xf32> to vector<16x1xf32>
    %26 = arith.addf %23, %25 : vector<16x1xf32>
    %27 = arith.negf %26 : vector<16x1xf32>
    %28 = math.exp %27 : vector<16x1xf32>
    %cst_17 = arith.constant 1.000000e+00 : f32
    %29 = vector.broadcast %cst_17 : f32 to vector<16x1xf32>
    %30 = arith.addf %29, %28 : vector<16x1xf32>
    %31 = arith.divf %29, %30 : vector<16x1xf32>
    %c0_18 = arith.constant 0 : index
    %c0_19 = arith.constant 0 : index
    %32 = vector.load %arg8[%c0_18, %c0_19] : memref<16x1xf32, #tpu.memory_space<vmem>>, vector<16x1xf32>
    tpu.vector_store %arg8[%c0_18, %c0_19], %31 {strides = array<i32>} : memref<16x1xf32, #tpu.memory_space<vmem>>, vector<16x1xf32>,
    return
  }
  func.func @transform_0(%arg0: i32) -> (i32, i32) {
    %c0_i32 = arith.constant 0 : i32
    %c0_i32_0 = arith.constant 0 : i32
    return %arg0, %c0_i32 : i32, i32
  }
  func.func @transform_1(%arg0: i32) -> (i32, i32) {
    %c0_i32 = arith.constant 0 : i32
    %c0_i32_0 = arith.constant 0 : i32
    %c0_i32_1 = arith.constant 0 : i32
    return %c0_i32, %c0_i32_0 : i32, i32
  }
  func.func @transform_2(%arg0: i32) -> (i32, i32) {
    %c0_i32 = arith.constant 0 : i32
    %c0_i32_0 = arith.constant 0 : i32
    %c0_i32_1 = arith.constant 0 : i32
    return %c0_i32, %c0_i32_0 : i32, i32
  }
  func.func @transform_3(%arg0: i32) -> (i32, i32) {
    %c0_i32 = arith.constant 0 : i32
    %c0_i32_0 = arith.constant 0 : i32
    %c0_i32_1 = arith.constant 0 : i32
    return %c0_i32, %c0_i32_0 : i32, i32
  }
  func.func @transform_4(%arg0: i32) -> (i32, i32) {
    %c0_i32 = arith.constant 0 : i32
    %c0_i32_0 = arith.constant 0 : i32
    %c0_i32_1 = arith.constant 0 : i32
    return %c0_i32, %c0_i32_0 : i32, i32
  }
  func.func @transform_5(%arg0: i32) -> (i32, i32) {
    %c0_i32 = arith.constant 0 : i32
    %c0_i32_0 = arith.constant 0 : i32
    %c0_i32_1 = arith.constant 0 : i32
    return %c0_i32, %c0_i32_0 : i32, i32
  }
  func.func @transform_6(%arg0: i32) -> (i32, i32) {
    %c0_i32 = arith.constant 0 : i32
    %c0_i32_0 = arith.constant 0 : i32
    %c0_i32_1 = arith.constant 0 : i32
    return %c0_i32, %c0_i32_0 : i32, i32
  }
  func.func @transform_7(%arg0: i32) -> (i32, i32) {
    %c0_i32 = arith.constant 0 : i32
    %c0_i32_0 = arith.constant 0 : i32
    return %arg0, %c0_i32 : i32, i32
  }
}

</mosaic_0001>

<bundles_post_ra>
// kernel: tpu_custom_call.1
= control target key start
LH: loop header
LB: loop body
LE: loop exit
PB: predicated region body
PF: predicated region fallthrough
CT: control target
= control target key end

     0   :  { %s3140_s0 = inlined_call_operand.hbm [shape: f32[8,784], index: 0, kind: input, shape index: {}]   ;;  %s3141_s1 = inlined_call_operand.hbm [shape: bf16[784,512], index: 1, kind: input, shape index: {}]   ;;  %s3142_s2 = inlined_call_operand.vmem [shape: f32[1,512], index: 2, kind: input, shape index: {}]   ;;  %s3143_s3 = inlined_call_operand.hbm [shape: bf16[512,256], index: 3, kind: input, shape index: {}]   ;;  %s3144_s4 = inlined_call_operand.vmem [shape: f32[1,256], index: 4, kind: input, shape index: {}]   ;;  %s3145_s5 = inlined_call_operand.vmem [shape: f32[1,256], index: 5, kind: input, shape index: {}]   ;;  %s3146_s6 = inlined_call_operand.<no memory space> [shape: f32[1,1], index: 6, kind: input, shape index: {}]   ;;  %s3147_s7 = inlined_call_operand.vmem [shape: f32[16,1], index: 7, kind: output, shape index: {}]  }
   0x1   :  { %v12_v0 = vstv %s3146_s6 }
   0x2   :  { %13 = vst [vmem:[#allocation2] sm:$0x1] %v12_v0 }
   0x3   :  { %14 = vsyncpa [#allocation4], 0 }
   0x4   :  { %15 = vsyncpa [#allocation6], 0 }
   0x5   :  { %20 = vsyncadd [#allocation4], 896  ;;  %s2982_s26 = smov [#allocation5]   ;;  %s2912_s30 = scalar_lea.hbm %s3141_s1, 25088 }
   0x6   :  { %s33_s27 = sshll.u32 %s2982_s26, 4  ;;  %p2913_p0 = scmp.ne.s32.totalorder %s3141_s1, %s2912_s30  ;;  %s34_s27 = int_to_ptr.vmem [resolvable:$true] %s33_s27 }
   0x7   :  { %p2916_p1 = scmp.lt.u32.totalorder %s2912_s30, %s3141_s1 }
   0x9   :  { %p2918_p2 = pnand %p2916_p1, %p2913_p0 }
   0xb   :  { %2921 = shalt.err (!%p2918_p2)
}
   0xc   :  { %s2922_s6 = scalar_lea.vmem %s34_s27, 25088  ;;  %p2927_p4 = scmp.lt.s32.totalorder %s34_s27, %s34_s27 }
   0xd   :  { %p2923_p3 = scmp.ne.s32.totalorder %s34_s27, %s2922_s6  ;;  %p2928_p5 = scmp.lt.s32.totalorder %s2922_s6, %s2922_s6 }
   0xf   :  { %p2929_p6 = por %p2928_p5, %p2927_p4 }
  0x11   :  { %p2930_p7 = pnand %p2929_p6, %p2923_p3 }
  0x13   :  { %2933 = shalt.err (!%p2930_p7)
}
  0x14   :  { %s2983_s12 = smov 256   ;;  %s2984_s13 = smov 16  }
  0x15   :  { %39 = dma.hbm_to_vmem [thread:$0]  %s3141_s1, 25088, %s34_s27, [#allocation6], %s2983_s12, %s2983_s12, %s2984_s13  }
  0x16   :  { %s2985_s16 = smov [#allocation3]   ;;  %s2934_s20 = scalar_lea.hbm %s3140_s0, 896 }
  0x17   :  { %s21_s17 = sshll.u32 %s2985_s16, 4  ;;  %p2935_p8 = scmp.ne.s32.totalorder %s3140_s0, %s2934_s20  ;;  %s22_s17 = int_to_ptr.vmem [resolvable:$true] %s21_s17 }
  0x18   :  { %p2938_p9 = scmp.lt.u32.totalorder %s2934_s20, %s3140_s0 }
  0x1a   :  { %p2940_p10 = pnand %p2938_p9, %p2935_p8 }
  0x1c   :  { %2943 = shalt.err (!%p2940_p10)
}
  0x1d   :  { %s2944_s25 = scalar_lea.vmem %s22_s17, 896  ;;  %s2948_s1 = scalar_lea.vmem %s22_s17, 1792 }
  0x1e   :  { %p2945_p11 = scmp.ne.s32.totalorder %s22_s17, %s2944_s25  ;;  %p2949_p12 = scmp.lt.s32.totalorder %s22_s17, %s22_s17 }
  0x1f   :  { %p2950_p13 = scmp.lt.s32.totalorder %s2948_s1, %s2944_s25 }
  0x21   :  { %p2951_p0 = por %p2950_p13, %p2949_p12 }
  0x23   :  { %p2952_p1 = pnand %p2951_p0, %p2945_p11 }
  0x25   :  { %2955 = shalt.err (!%p2952_p1)
}
  0x26   :  { %s2986_s26 = smov 896   ;;  %s2987_s27 = smov 56  }
  0x27   :  { %27 = dma.hbm_to_vmem [thread:$0]  %s3140_s0, 896, %s22_s17, [#allocation4], %s2986_s26, %s2986_s26, %s2987_s27  }
  0x28   :  { %s2988_s30 = smov [#allocation7]   ;;  %s2956_s11 = scalar_lea.hbm %s3143_s3, 8192 }
  0x29   :  { %s47_s8 = sshll.u32 %s2988_s30, 4  ;;  %p2957_p2 = scmp.ne.s32.totalorder %s3143_s3, %s2956_s11  ;;  %s48_s8 = int_to_ptr.vmem [resolvable:$true] %s47_s8 }
  0x2a   :  { %p2960_p3 = scmp.lt.u32.totalorder %s2956_s11, %s3143_s3 }
  0x2c   :  { %p2962_p4 = pnand %p2960_p3, %p2957_p2 }
  0x2e   :  { %2965 = shalt.err (!%p2962_p4)
}
  0x2f   :  { %s2966_s15 = scalar_lea.vmem %s48_s8, 8192  ;;  %p2971_p6 = scmp.lt.s32.totalorder %s48_s8, %s48_s8 }
  0x30   :  { %p2967_p5 = scmp.ne.s32.totalorder %s48_s8, %s2966_s15  ;;  %p2972_p7 = scmp.lt.s32.totalorder %s2966_s15, %s2966_s15 }
  0x32   :  { %p2973_p8 = por %p2972_p7, %p2971_p6 }
  0x34   :  { %p2974_p9 = pnand %p2973_p8, %p2967_p5 }
  0x36   :  { %2977 = shalt.err (!%p2974_p9)
}
  0x37   :  { %s2989_s0 = smov 128   ;;  %s2990_s16 = smov 8  }
  0x38   :  { %53 = dma.hbm_to_vmem [thread:$0]  %s3143_s3, 8192, %s48_s8, [#allocation6], %s2989_s0, %s2989_s0, %s2990_s16  }
  0x39   :  { %2978 = dma.done.wait [#allocation4], 1792  }
  0x3a   :  { %2979 = vsyncadd [#allocation4], 4294965504 }
  0x3b   :  { %2980 = dma.done.wait [#allocation6], 33280  }
  0x3c   :  { %2981 = vsyncadd [#allocation6], 4294934016  ;;  %v2514_v1 = vld [vmem:[#allocation5 + $0x4] ss:$16 sps:$4 sm:$0xff]   ;;  %v2518_v3 = vld [vmem:[#allocation5] ss:$16 sps:$4 sm:$0xff]  }
  0x3d   :  { %v2516_v2 = vld [vmem:[#allocation5 + $0x204] ss:$16 sps:$4 sm:$0xff]   ;;  %1293 = vmatprep.subr.bf16.mxu1 %v2514_v1  ;;  %v2519_v4 = vld [vmem:[#allocation5 + $0x200] ss:$16 sps:$4 sm:$0xff]   ;;  %v71_v47 = vld [vmem:[#allocation3 + $0x8] sm:$0xff]  ;;  %vm1289_vm0 = vcmask 130048  }
  0x3e   :  { %1336 = vmatprep.subr.bf16.mxu0 %v2516_v2  ;;  %v2520_v5 = vld [vmem:[#allocation5 + $0x24] ss:$16 sps:$4 sm:$0xff]   ;;  %1294 = vmatpush1.bf16.msra.mxu1 %v2518_v3  ;;  %v2524_v7 = vld [vmem:[#allocation5 + $0x20] ss:$16 sps:$4 sm:$0xff]   ;;  %v73_v52 = vld [vmem:[#allocation3 + $0x18] sm:$0xff]  ;;  %vm2190_vm1 = vcmask 7168  }
  0x3f   :  { %1337 = vmatpush1.bf16.msra.mxu0 %v2519_v4  ;;  %v2522_v6 = vld [vmem:[#allocation5 + $0x224] ss:$16 sps:$4 sm:$0xff]   ;;  %1295 = vmatprep.subr.bf16.mxu1 %v2520_v5  ;;  %v2525_v8 = vld [vmem:[#allocation5 + $0x220] ss:$16 sps:$4 sm:$0xff]  }
  0x40   :  { %1338 = vmatprep.subr.bf16.mxu0 %v2522_v6  ;;  %v2526_v9 = vld [vmem:[#allocation5 + $0x44] ss:$16 sps:$4 sm:$0xff]   ;;  %v2530_v11 = vld [vmem:[#allocation5 + $0x40] ss:$16 sps:$4 sm:$0xff]  }
  0x41   :  { %v2528_v10 = vld [vmem:[#allocation5 + $0x244] ss:$16 sps:$4 sm:$0xff]   ;;  %v2531_v12 = vld [vmem:[#allocation5 + $0x240] ss:$16 sps:$4 sm:$0xff]  }
  0x42   :  { %1296 = vmatpush1.bf16.msra.mxu1 %v2524_v7  ;;  %v2532_v13 = vld [vmem:[#allocation5 + $0x64] ss:$16 sps:$4 sm:$0xff]   ;;  %v2536_v15 = vld [vmem:[#allocation5 + $0x60] ss:$16 sps:$4 sm:$0xff]  }
  0x43   :  { %1339 = vmatpush1.bf16.msra.mxu0 %v2525_v8  ;;  %1297 = vmatprep.subr.bf16.mxu1 %v2526_v9  ;;  %v2534_v14 = vld [vmem:[#allocation5 + $0x264] ss:$16 sps:$4 sm:$0xff]   ;;  %v2537_v16 = vld [vmem:[#allocation5 + $0x260] ss:$16 sps:$4 sm:$0xff]   ;;  %v77_v8 = vld [vmem:[#allocation3 + $0x38] sm:$0xff] }
  0x44   :  { %1340 = vmatprep.subr.bf16.mxu0 %v2528_v10  ;;  %v2538_v17 = vld [vmem:[#allocation5 + $0x84] ss:$16 sps:$4 sm:$0xff]   ;;  %v2542_v19 = vld [vmem:[#allocation5 + $0x80] ss:$16 sps:$4 sm:$0xff]  }
  0x45   :  { %v2540_v18 = vld [vmem:[#allocation5 + $0x284] ss:$16 sps:$4 sm:$0xff]   ;;  %v2543_v20 = vld [vmem:[#allocation5 + $0x280] ss:$16 sps:$4 sm:$0xff]  }
  0x46   :  { %1298 = vmatpush1.bf16.msra.mxu1 %v2530_v11  ;;  %v2544_v21 = vld [vmem:[#allocation5 + $0xa4] ss:$16 sps:$4 sm:$0xff]   ;;  %v2548_v23 = vld [vmem:[#allocation5 + $0xa0] ss:$16 sps:$4 sm:$0xff]   ;;  %v79_v11 = vld [vmem:[#allocation3 + $0x48] sm:$0xff] }
  0x47   :  { %1341 = vmatpush1.bf16.msra.mxu0 %v2531_v12  ;;  %1299 = vmatprep.subr.bf16.mxu1 %v2532_v13  ;;  %v2546_v22 = vld [vmem:[#allocation5 + $0x2a4] ss:$16 sps:$4 sm:$0xff]   ;;  %v2549_v24 = vld [vmem:[#allocation5 + $0x2a0] ss:$16 sps:$4 sm:$0xff]   ;;  %v2615_v12 = vld [vmem:[#allocation5 + $0xc] ss:$16 sps:$4 sm:$0xff]  }
  0x48   :  { %1342 = vmatprep.subr.bf16.mxu0 %v2534_v14  ;;  %v2550_v25 = vld [vmem:[#allocation5 + $0xc4] ss:$16 sps:$4 sm:$0xff]   ;;  %v2554_v27 = vld [vmem:[#allocation5 + $0xc0] ss:$16 sps:$4 sm:$0xff]  }
  0x49   :  { %v2552_v26 = vld [vmem:[#allocation5 + $0x2c4] ss:$16 sps:$4 sm:$0xff]   ;;  %v2555_v28 = vld [vmem:[#allocation5 + $0x2c0] ss:$16 sps:$4 sm:$0xff]  }
  0x4a   :  { %1300 = vmatpush1.bf16.msra.mxu1 %v2536_v15  ;;  %v2556_v29 = vld [vmem:[#allocation5 + $0xe4] ss:$16 sps:$4 sm:$0xff]   ;;  %v2560_v31 = vld [vmem:[#allocation5 + $0xe0] ss:$16 sps:$4 sm:$0xff]   ;;  %v2613_v15 = vld [vmem:[#allocation5 + $0x8] ss:$16 sps:$4 sm:$0xff]  }
  0x4b   :  { %1343 = vmatpush1.bf16.msra.mxu0 %v2537_v16  ;;  %1301 = vmatprep.subr.bf16.mxu1 %v2538_v17  ;;  %v2558_v30 = vld [vmem:[#allocation5 + $0x2e4] ss:$16 sps:$4 sm:$0xff]   ;;  %v2561_v32 = vld [vmem:[#allocation5 + $0x2e0] ss:$16 sps:$4 sm:$0xff]  }
  0x4c   :  { %1344 = vmatprep.subr.bf16.mxu0 %v2540_v18  ;;  %v2562_v33 = vld [vmem:[#allocation5 + $0x104] ss:$16 sps:$4 sm:$0xff]   ;;  %v2566_v35 = vld [vmem:[#allocation5 + $0x100] ss:$16 sps:$4 sm:$0xff]   ;;  %v2621_v18 = vld [vmem:[#allocation5 + $0x2c] ss:$16 sps:$4 sm:$0xff]  }
  0x4d   :  { %v2564_v34 = vld [vmem:[#allocation5 + $0x304] ss:$16 sps:$4 sm:$0xff]   ;;  %v2567_v36 = vld [vmem:[#allocation5 + $0x300] ss:$16 sps:$4 sm:$0xff]  }
  0x4e   :  { %1302 = vmatpush1.bf16.msra.mxu1 %v2542_v19  ;;  %v2568_v37 = vld [vmem:[#allocation5 + $0x124] ss:$16 sps:$4 sm:$0xff]   ;;  %v2572_v39 = vld [vmem:[#allocation5 + $0x120] ss:$16 sps:$4 sm:$0xff]  }
  0x4f   :  { %1345 = vmatpush1.bf16.msra.mxu0 %v2543_v20  ;;  %1303 = vmatprep.subr.bf16.mxu1 %v2544_v21  ;;  %v2570_v38 = vld [vmem:[#allocation5 + $0x324] ss:$16 sps:$4 sm:$0xff]   ;;  %v2573_v40 = vld [vmem:[#allocation5 + $0x320] ss:$16 sps:$4 sm:$0xff]   ;;  %v2619_v20 = vld [vmem:[#allocation5 + $0x28] ss:$16 sps:$4 sm:$0xff]  }
  0x50   :  { %1346 = vmatprep.subr.bf16.mxu0 %v2546_v22  ;;  %v2574_v41 = vld [vmem:[#allocation5 + $0x144] ss:$16 sps:$4 sm:$0xff]   ;;  %v2578_v43 = vld [vmem:[#allocation5 + $0x140] ss:$16 sps:$4 sm:$0xff]   ;;  %v2627_v22 = vld [vmem:[#allocation5 + $0x4c] ss:$16 sps:$4 sm:$0xff]  }
  0x51   :  { %v2576_v42 = vld [vmem:[#allocation5 + $0x344] ss:$16 sps:$4 sm:$0xff]   ;;  %v2579_v44 = vld [vmem:[#allocation5 + $0x340] ss:$16 sps:$4 sm:$0xff]  }
  0x52   :  { %1304 = vmatpush1.bf16.msra.mxu1 %v2548_v23  ;;  %v2580_v45 = vld [vmem:[#allocation5 + $0x164] ss:$16 sps:$4 sm:$0xff]   ;;  %v2584_v48 = vld [vmem:[#allocation5 + $0x160] ss:$16 sps:$4 sm:$0xff]  }
  0x53   :  { %1347 = vmatpush1.bf16.msra.mxu0 %v2549_v24  ;;  %1305 = vmatprep.subr.bf16.mxu1 %v2550_v25  ;;  %v2582_v46 = vld [vmem:[#allocation5 + $0x364] ss:$16 sps:$4 sm:$0xff]   ;;  %v2585_v49 = vld [vmem:[#allocation5 + $0x360] ss:$16 sps:$4 sm:$0xff]   ;;  %v2625_v24 = vld [vmem:[#allocation5 + $0x48] ss:$16 sps:$4 sm:$0xff]  }
  0x54   :  { %1348 = vmatprep.subr.bf16.mxu0 %v2552_v26  ;;  %v78_v50 = vld [vmem:[#allocation3 + $0x40] sm:$0xff]  ;;  %v80_v53 = vld [vmem:[#allocation3 + $0x50] sm:$0xff]  ;;  %v2633_v26 = vld [vmem:[#allocation5 + $0x6c] ss:$16 sps:$4 sm:$0xff]  }
  0x55   :  { %v3071_v51 = vpack.c.bf16 %v78_v50, %v71_v47  ;;  %v2586_v54 = vld [vmem:[#allocation5 + $0x184] ss:$16 sps:$4 sm:$0xff]   ;;  %v3073_v56 = vpack.c.bf16 %v80_v53, %v73_v52  ;;  %v2590_v57 = vld [vmem:[#allocation5 + $0x180] ss:$16 sps:$4 sm:$0xff]   ;;  %v2655_v47 = vld [vmem:[#allocation5 + $0xe8] ss:$16 sps:$4 sm:$0xff]  }
  0x56   :  { %1306 = vmatpush1.bf16.msra.mxu1 %v2554_v27  ;;  %v2588_v55 = vld [vmem:[#allocation5 + $0x384] ss:$16 sps:$4 sm:$0xff]   ;;  %v2591_v58 = vld [vmem:[#allocation5 + $0x380] ss:$16 sps:$4 sm:$0xff]   ;;  %v2669_v53 = vld [vmem:[#allocation5 + $0x12c] ss:$16 sps:$4 sm:$0xff]  }
  0x57   :  { %1349 = vmatpush1.bf16.msra.mxu0 %v2555_v28  ;;  %1307 = vmatprep.subr.bf16.mxu1 %v2556_v29  ;;  %v2592_v59 = vld [vmem:[#allocation5 + $0x1a4] ss:$16 sps:$4 sm:$0xff]   ;;  %v2596_v61 = vld [vmem:[#allocation5 + $0x1a0] ss:$16 sps:$4 sm:$0xff]   ;;  %v2631_v28 = vld [vmem:[#allocation5 + $0x68] ss:$16 sps:$4 sm:$0xff]  }
  0x58   :  { %1350 = vmatprep.subr.bf16.mxu0 %v2558_v30  ;;  %1325 = vmatprep.mubr.bf16.mxu1 %v3071_v51  ;;  %v2594_v60 = vld [vmem:[#allocation5 + $0x3a4] ss:$16 sps:$4 sm:$0xff]   ;;  %v2597_v62 = vld [vmem:[#allocation5 + $0x3a0] ss:$16 sps:$4 sm:$0xff]   ;;  %v2639_v30 = vld [vmem:[#allocation5 + $0x8c] ss:$16 sps:$4 sm:$0xff]  }
  0x59   :  { %1368 = vmatprep.mubr.bf16.mxu0 %v3073_v56  ;;  %v2598_v63 = vld [vmem:[#allocation5 + $0x1c4] ss:$16 sps:$4 sm:$0xff]   ;;  %v2602_v1 = vld [vmem:[#allocation5 + $0x1c0] ss:$16 sps:$4 sm:$0xff]  }
  0x5a   :  { %1308 = vmatpush1.bf16.msra.mxu1 %v2560_v31  ;;  %v2600_v0 = vld [vmem:[#allocation5 + $0x3c4] ss:$16 sps:$4 sm:$0xff]   ;;  %v2603_v2 = vld [vmem:[#allocation5 + $0x3c0] ss:$16 sps:$4 sm:$0xff]  }
  0x5b   :  { %1351 = vmatpush1.bf16.msra.mxu0 %v2561_v32  ;;  %1309 = vmatprep.subr.bf16.mxu1 %v2562_v33  ;;  %v2604_v3 = vld [vmem:[#allocation5 + $0x1e4] ss:$16 sps:$4 sm:$0xff]   ;;  %v2608_v5 = vld [vmem:[#allocation5 + $0x1e0] ss:$16 sps:$4 sm:$0xff]   ;;  %v2637_v32 = vld [vmem:[#allocation5 + $0x88] ss:$16 sps:$4 sm:$0xff]  }
  0x5c   :  { %1352 = vmatprep.subr.bf16.mxu0 %v2564_v34  ;;  %v2606_v4 = vld [vmem:[#allocation5 + $0x3e4] ss:$16 sps:$4 sm:$0xff]   ;;  %v2609_v6 = vld [vmem:[#allocation5 + $0x3e0] ss:$16 sps:$4 sm:$0xff]   ;;  %v2645_v34 = vld [vmem:[#allocation5 + $0xac] ss:$16 sps:$4 sm:$0xff]  }
  0x5d   :  { %v70_v7 = vld [vmem:[#allocation3] sm:$0xff]  ;;  %v72_v10 = vld [vmem:[#allocation3 + $0x10] sm:$0xff] }
  0x5e   :  { %1310 = vmatpush1.bf16.msra.mxu1 %v2566_v35  ;;  %v2612_v9 = vld [vmem:[#allocation5 + $0x404] ss:$16 sps:$4 sm:$0xff]   ;;  %v3077_v13 = vpack.c.bf16 %v77_v8, %v70_v7  ;;  %v2610_v14 = vld [vmem:[#allocation5 + $0x400] ss:$16 sps:$4 sm:$0xff]   ;;  %v3079_v16 = vpack.c.bf16 %v79_v11, %v72_v10  ;;  %v2691_v8 = vld [vmem:[#allocation5 + $0x1a8] ss:$16 sps:$4 sm:$0xff]  }
  0x5f   :  { %1353 = vmatpush1.bf16.msra.mxu0 %v2567_v36  ;;  %1311 = vmatprep.subr.bf16.mxu1 %v2568_v37  ;;  %v2618_v17 = vld [vmem:[#allocation5 + $0x424] ss:$16 sps:$4 sm:$0xff]   ;;  %v2616_v19 = vld [vmem:[#allocation5 + $0x420] ss:$16 sps:$4 sm:$0xff]   ;;  %v2643_v36 = vld [vmem:[#allocation5 + $0xa8] ss:$16 sps:$4 sm:$0xff]  }
  0x60   :  { %1354 = vmatprep.subr.bf16.mxu0 %v2570_v38  ;;  %v2624_v21 = vld [vmem:[#allocation5 + $0x444] ss:$16 sps:$4 sm:$0xff]   ;;  %v2622_v23 = vld [vmem:[#allocation5 + $0x440] ss:$16 sps:$4 sm:$0xff]   ;;  %v2651_v38 = vld [vmem:[#allocation5 + $0xcc] ss:$16 sps:$4 sm:$0xff]  }
  0x61   :  { %v2630_v25 = vld [vmem:[#allocation5 + $0x464] ss:$16 sps:$4 sm:$0xff]   ;;  %v2628_v27 = vld [vmem:[#allocation5 + $0x460] ss:$16 sps:$4 sm:$0xff]   ;;  %v2699_v10 = vld [vmem:[#allocation5 + $0x1cc] ss:$16 sps:$4 sm:$0xff]  }
  0x62   :  { %1312 = vmatpush1.bf16.msra.mxu1 %v2572_v39  ;;  %v2636_v29 = vld [vmem:[#allocation5 + $0x484] ss:$16 sps:$4 sm:$0xff]   ;;  %v2634_v31 = vld [vmem:[#allocation5 + $0x480] ss:$16 sps:$4 sm:$0xff]  }
  0x63   :  { %1355 = vmatpush1.bf16.msra.mxu0 %v2573_v40  ;;  %1313 = vmatprep.subr.bf16.mxu1 %v2574_v41  ;;  %v2642_v33 = vld [vmem:[#allocation5 + $0x4a4] ss:$16 sps:$4 sm:$0xff]   ;;  %v2640_v35 = vld [vmem:[#allocation5 + $0x4a0] ss:$16 sps:$4 sm:$0xff]   ;;  %v2649_v40 = vld [vmem:[#allocation5 + $0xc8] ss:$16 sps:$4 sm:$0xff]  }
  0x64   :  { %1356 = vmatprep.subr.bf16.mxu0 %v2576_v42  ;;  %v2648_v37 = vld [vmem:[#allocation5 + $0x4c4] ss:$16 sps:$4 sm:$0xff]   ;;  %v2646_v39 = vld [vmem:[#allocation5 + $0x4c0] ss:$16 sps:$4 sm:$0xff]   ;;  %v75_v42 = vld [vmem:[#allocation3 + $0x28] sm:$0xff] }
  0x65   :  { %v2654_v41 = vld [vmem:[#allocation5 + $0x4e4] ss:$16 sps:$4 sm:$0xff]   ;;  %v2658_v50 = vld [vmem:[#allocation5 + $0x500] ss:$16 sps:$4 sm:$0xff]  }
  0x66   :  { %1314 = vmatpush1.bf16.msra.mxu1 %v2578_v43  ;;  %v82_v43 = vld [vmem:[#allocation3 + $0x60] sm:$0xff] }
  0x67   :  { %1357 = vmatpush1.bf16.msra.mxu0 %v2579_v44  ;;  %1315 = vmatprep.subr.bf16.mxu1 %v2580_v45  ;;  %v2657_v44 = vld [vmem:[#allocation5 + $0xec] ss:$16 sps:$4 sm:$0xff]   ;;  %v3084_v45 = vpack.c.bf16 %v82_v43, %v75_v42  ;;  %v2666_v52 = vld [vmem:[#allocation5 + $0x524] ss:$16 sps:$4 sm:$0xff]   ;;  %v2688_v7 = vld [vmem:[#allocation5 + $0x5a0] ss:$16 sps:$4 sm:$0xff]  }
  0x68   :  { %1358 = vmatprep.subr.bf16.mxu0 %v2582_v46  ;;  %v2652_v46 = vld [vmem:[#allocation5 + $0x4e0] ss:$16 sps:$4 sm:$0xff]   ;;  %v2810_v42 = vld [vmem:[#allocation7 + $0x4] ss:$8 sps:$4 sm:$0xff]   ;;  %v2813_v43 = vld [vmem:[#allocation7 + $0x14] ss:$8 sps:$4 sm:$0xff]  }
  0x69   :  { %v2694_v11 = vld [vmem:[#allocation5 + $0x5c0] ss:$16 sps:$4 sm:$0xff]  }
  0x6a   :  { %1316 = vmatpush1.bf16.msra.mxu1 %v2584_v48  ;;  %v2660_v48 = vld [vmem:[#allocation5 + $0x504] ss:$16 sps:$4 sm:$0xff]  }
  0x6b   :  { %1359 = vmatpush1.bf16.msra.mxu0 %v2585_v49  ;;  %1317 = vmatprep.subr.bf16.mxu1 %v2586_v54  ;;  %v2663_v49 = vld [vmem:[#allocation5 + $0x10c] ss:$16 sps:$4 sm:$0xff]   ;;  %v2664_v54 = vld [vmem:[#allocation5 + $0x520] ss:$16 sps:$4 sm:$0xff]  }
  0x6c   :  { %1360 = vmatprep.subr.bf16.mxu0 %v2588_v55  ;;  %v2667_v55 = vld [vmem:[#allocation5 + $0x128] ss:$16 sps:$4 sm:$0xff]  }
  0x6e   :  { %1318 = vmatpush1.bf16.msra.mxu1 %v2590_v57  ;;  %v2672_v57 = vld [vmem:[#allocation5 + $0x544] ss:$16 sps:$4 sm:$0xff]  }
  0x6f   :  { %1361 = vmatpush1.bf16.msra.mxu0 %v2591_v58  ;;  %1319 = vmatprep.subr.bf16.mxu1 %v2592_v59  ;;  %v2675_v58 = vld [vmem:[#allocation5 + $0x14c] ss:$16 sps:$4 sm:$0xff]   ;;  %v2670_v59 = vld [vmem:[#allocation5 + $0x540] ss:$16 sps:$4 sm:$0xff]  }
  0x70   :  { %1362 = vmatprep.subr.bf16.mxu0 %v2594_v60  ;;  %v2673_v60 = vld [vmem:[#allocation5 + $0x148] ss:$16 sps:$4 sm:$0xff]  }
  0x72   :  { %1320 = vmatpush1.bf16.msra.mxu1 %v2596_v61  ;;  %v2678_v61 = vld [vmem:[#allocation5 + $0x564] ss:$16 sps:$4 sm:$0xff]  }
  0x73   :  { %1363 = vmatpush1.bf16.msra.mxu0 %v2597_v62  ;;  %1321 = vmatprep.subr.bf16.mxu1 %v2598_v63  ;;  %v2681_v62 = vld [vmem:[#allocation5 + $0x16c] ss:$16 sps:$4 sm:$0xff]   ;;  %v2676_v63 = vld [vmem:[#allocation5 + $0x560] ss:$16 sps:$4 sm:$0xff]  }
  0x74   :  { %1364 = vmatprep.subr.bf16.mxu0 %v2600_v0  ;;  %v2679_v0 = vld [vmem:[#allocation5 + $0x168] ss:$16 sps:$4 sm:$0xff]  }
  0x76   :  { %1322 = vmatpush1.bf16.msra.mxu1 %v2602_v1  ;;  %v2684_v1 = vld [vmem:[#allocation5 + $0x584] ss:$16 sps:$4 sm:$0xff]  }
  0x77   :  { %1365 = vmatpush1.bf16.msra.mxu0 %v2603_v2  ;;  %1323 = vmatprep.subr.bf16.mxu1 %v2604_v3  ;;  %v2687_v2 = vld [vmem:[#allocation5 + $0x18c] ss:$16 sps:$4 sm:$0xff]   ;;  %v2682_v3 = vld [vmem:[#allocation5 + $0x580] ss:$16 sps:$4 sm:$0xff]  }
  0x78   :  { %1366 = vmatprep.subr.bf16.mxu0 %v2606_v4  ;;  %v2685_v4 = vld [vmem:[#allocation5 + $0x188] ss:$16 sps:$4 sm:$0xff]  }
  0x7a   :  { %1324 = vmatpush1.bf16.msra.mxu1 %v2608_v5  ;;  %v2690_v5 = vld [vmem:[#allocation5 + $0x5a4] ss:$16 sps:$4 sm:$0xff]  }
  0x7b   :  { %1367 = vmatpush1.bf16.msra.mxu0 %v2609_v6  ;;  %1465 = vmatprep.subr.bf16.mxu1 %v2615_v12  ;;  %v2693_v6 = vld [vmem:[#allocation5 + $0x1ac] ss:$16 sps:$4 sm:$0xff]   ;;  %v2697_v12 = vld [vmem:[#allocation5 + $0x1c8] ss:$16 sps:$4 sm:$0xff]  }
  0x7c   :  { %1379 = vmatprep.subr.bf16.mxu0 %v2612_v9  ;;  %v2696_v9 = vld [vmem:[#allocation5 + $0x5c4] ss:$16 sps:$4 sm:$0xff]  }
  0x7d   :  { %1326 = vmatmul.mubr.bf16.vlgmr.msra.gmra.mrb[0].mxu1 %v3077_v13 }
  0x7e   :  { %1369 = vmatmul.mubr.bf16.vlgmr.msra.gmra.mrb[0].mxu0 %v3079_v16  ;;  %1466 = vmatpush1.bf16.msra.mxu1 %v2613_v15  ;;  %v2705_v15 = vld [vmem:[#allocation5 + $0x1ec] ss:$16 sps:$4 sm:$0xff]  }
  0x7f   :  { %1380 = vmatpush1.bf16.msra.mxu0 %v2610_v14  ;;  %1467 = vmatprep.subr.bf16.mxu1 %v2621_v18  ;;  %v2702_v14 = vld [vmem:[#allocation5 + $0x5e4] ss:$16 sps:$4 sm:$0xff]   ;;  %v2703_v18 = vld [vmem:[#allocation5 + $0x1e8] ss:$16 sps:$4 sm:$0xff]  }
  0x80   :  { %1381 = vmatprep.subr.bf16.mxu0 %v2618_v17  ;;  %1497 = vmatprep.mubr.bf16.mxu1 %v3071_v51  ;;  %v2661_v51 = vld [vmem:[#allocation5 + $0x108] ss:$16 sps:$4 sm:$0xff]   ;;  %v2700_v17 = vld [vmem:[#allocation5 + $0x5e0] ss:$16 sps:$4 sm:$0xff]  }
  0x81   :  { %1411 = vmatprep.mubr.bf16.mxu0 %v3084_v45 }
  0x82   :  { %1468 = vmatpush1.bf16.msra.mxu1 %v2619_v20  ;;  %v81_v20 = vld [vmem:[#allocation3 + $0x58] sm:$0xff] }
  0x83   :  { %1382 = vmatpush1.bf16.msra.mxu0 %v2616_v19  ;;  %1469 = vmatprep.subr.bf16.mxu1 %v2627_v22  ;;  %v74_v19 = vld [vmem:[#allocation3 + $0x20] sm:$0xff] }
  0x84   :  { %1383 = vmatprep.subr.bf16.mxu0 %v2624_v21  ;;  %v2708_v21 = vld [vmem:[#allocation5 + $0x20c] ss:$16 sps:$4 sm:$0xff]   ;;  %v2714_v22 = vld [vmem:[#allocation5 + $0x604] ss:$16 sps:$4 sm:$0xff]  }
  0x86   :  { %1470 = vmatpush1.bf16.msra.mxu1 %v2625_v24  ;;  %v2706_v24 = vld [vmem:[#allocation5 + $0x208] ss:$16 sps:$4 sm:$0xff]  }
  0x87   :  { %1384 = vmatpush1.bf16.msra.mxu0 %v2622_v23  ;;  %1471 = vmatprep.subr.bf16.mxu1 %v2633_v26  ;;  %v3087_v23 = vpack.c.bf16 %v81_v20, %v74_v19  ;;  %v2711_v26 = vld [vmem:[#allocation5 + $0x22c] ss:$16 sps:$4 sm:$0xff]   ;;  %v2757_v20 = vld [vmem:[#allocation5 + $0x408] ss:$16 sps:$4 sm:$0xff]  }
  0x88   :  { %1385 = vmatprep.subr.bf16.mxu0 %v2630_v25  ;;  %v2712_v25 = vld [vmem:[#allocation5 + $0x600] ss:$16 sps:$4 sm:$0xff]   ;;  %v2840_v19 = vld [vmem:[#allocation7 + $0xa4] ss:$8 sps:$4 sm:$0xff]  }
  0x8a   :  { %1472 = vmatpush1.bf16.msra.mxu1 %v2631_v28  ;;  %v2717_v28 = vld [vmem:[#allocation5 + $0x24c] ss:$16 sps:$4 sm:$0xff]  }
  0x8b   :  { %1386 = vmatpush1.bf16.msra.mxu0 %v2628_v27  ;;  %1473 = vmatprep.subr.bf16.mxu1 %v2639_v30  ;;  %v2709_v27 = vld [vmem:[#allocation5 + $0x228] ss:$16 sps:$4 sm:$0xff]  }
  0x8c   :  { %1387 = vmatprep.subr.bf16.mxu0 %v2636_v29  ;;  %v2991_v29 = vmov 0   ;;  %v2715_v30 = vld [vmem:[#allocation5 + $0x248] ss:$16 sps:$4 sm:$0xff]  }
  0x8e   :  { %1474 = vmatpush1.bf16.msra.mxu1 %v2637_v32  ;;  %v83_v32 = vld [vmem:[#allocation3 + $0x68] sm:$0xff] }
  0x8f   :  { %1388 = vmatpush1.bf16.msra.mxu0 %v2634_v31  ;;  %1475 = vmatprep.subr.bf16.mxu1 %v2645_v34  ;;  %v76_v31 = vld [vmem:[#allocation3 + $0x30] sm:$0xff]  ;;  %v2718_v34 = vld [vmem:[#allocation5 + $0x268] ss:$16 sps:$4 sm:$0xff]  }
  0x90   :  { %1389 = vmatprep.subr.bf16.mxu0 %v2642_v33  ;;  %v2720_v33 = vld [vmem:[#allocation5 + $0x26c] ss:$16 sps:$4 sm:$0xff]  }
  0x92   :  { %1476 = vmatpush1.bf16.msra.mxu1 %v2643_v36  ;;  %v2721_v36 = vld [vmem:[#allocation5 + $0x288] ss:$16 sps:$4 sm:$0xff]  }
  0x93   :  { %1390 = vmatpush1.bf16.msra.mxu0 %v2640_v35  ;;  %1477 = vmatprep.subr.bf16.mxu1 %v2651_v38  ;;  %v3093_v35 = vpack.c.bf16 %v83_v32, %v76_v31  ;;  %v2724_v38 = vld [vmem:[#allocation5 + $0x2a8] ss:$16 sps:$4 sm:$0xff]   ;;  %v2768_v31 = vld [vmem:[#allocation5 + $0x46c] ss:$16 sps:$4 sm:$0xff]  }
  0x94   :  { %1391 = vmatprep.subr.bf16.mxu0 %v2648_v37  ;;  %v2726_v37 = vld [vmem:[#allocation5 + $0x2ac] ss:$16 sps:$4 sm:$0xff]   ;;  %v2844_v32 = vld [vmem:[#allocation7 + $0xc0] ss:$8 sps:$4 sm:$0xff]  }
  0x96   :  { %1478 = vmatpush1.bf16.msra.mxu1 %v2649_v40  ;;  %v2732_v40 = vld [vmem:[#allocation5 + $0x2ec] ss:$16 sps:$4 sm:$0xff]  }
  0x97   :  { %1392 = vmatpush1.bf16.msra.mxu0 %v2646_v39  ;;  %1479 = vmatprep.subr.bf16.mxu1 %v2657_v44  ;;  %v2729_v39 = vld [vmem:[#allocation5 + $0x2cc] ss:$16 sps:$4 sm:$0xff]   ;;  %v2730_v44 = vld [vmem:[#allocation5 + $0x2e8] ss:$16 sps:$4 sm:$0xff]  }
  0x98   :  { %1393 = vmatprep.subr.bf16.mxu0 %v2654_v41  ;;  %v2808_v41 = vld [vmem:[#allocation7] ss:$8 sps:$4 sm:$0xff]  }
  0x9a   :  { %1480 = vmatpush1.bf16.msra.mxu1 %v2655_v47  ;;  %v2811_v47 = vld [vmem:[#allocation7 + $0x10] ss:$8 sps:$4 sm:$0xff]  }
  0x9b   :  { %1394 = vmatpush1.bf16.msra.mxu0 %v2652_v46  ;;  %1481 = vmatprep.subr.bf16.mxu1 %v2663_v49  ;;  %v2735_v46 = vld [vmem:[#allocation5 + $0x30c] ss:$16 sps:$4 sm:$0xff]   ;;  %v2733_v49 = vld [vmem:[#allocation5 + $0x308] ss:$16 sps:$4 sm:$0xff]  }
  0x9c   :  { %1395 = vmatprep.subr.bf16.mxu0 %v2660_v48  ;;  %v2816_v48 = vld [vmem:[#allocation7 + $0x24] ss:$8 sps:$4 sm:$0xff]  }
  0x9e   :  { %1482 = vmatpush1.bf16.msra.mxu1 %v2661_v51  ;;  %v2814_v51 = vld [vmem:[#allocation7 + $0x20] ss:$8 sps:$4 sm:$0xff]  }
  0x9f   :  { %1396 = vmatpush1.bf16.msra.mxu0 %v2658_v50  ;;  %1483 = vmatprep.subr.bf16.mxu1 %v2669_v53  ;;  %v2738_v50 = vld [vmem:[#allocation5 + $0x32c] ss:$16 sps:$4 sm:$0xff]  }
  0xa0   :  { %1397 = vmatprep.subr.bf16.mxu0 %v2666_v52  ;;  %v2736_v52 = vld [vmem:[#allocation5 + $0x328] ss:$16 sps:$4 sm:$0xff]   ;;  %v2819_v53 = vld [vmem:[#allocation7 + $0x34] ss:$8 sps:$4 sm:$0xff]  }
  0xa2   :  { %1484 = vmatpush1.bf16.msra.mxu1 %v2667_v55  ;;  %v2817_v55 = vld [vmem:[#allocation7 + $0x30] ss:$8 sps:$4 sm:$0xff]  }
  0xa3   :  { %1398 = vmatpush1.bf16.msra.mxu0 %v2664_v54  ;;  %1485 = vmatprep.subr.bf16.mxu1 %v2675_v58  ;;  %v2741_v54 = vld [vmem:[#allocation5 + $0x34c] ss:$16 sps:$4 sm:$0xff]   ;;  %v2739_v58 = vld [vmem:[#allocation5 + $0x348] ss:$16 sps:$4 sm:$0xff]  }
  0xa4   :  { %1399 = vmatprep.subr.bf16.mxu0 %v2672_v57  ;;  %v2822_v57 = vld [vmem:[#allocation7 + $0x44] ss:$8 sps:$4 sm:$0xff]  }
  0xa6   :  { %1486 = vmatpush1.bf16.msra.mxu1 %v2673_v60  ;;  %v2820_v60 = vld [vmem:[#allocation7 + $0x40] ss:$8 sps:$4 sm:$0xff]  }
  0xa7   :  { %1400 = vmatpush1.bf16.msra.mxu0 %v2670_v59  ;;  %1487 = vmatprep.subr.bf16.mxu1 %v2681_v62  ;;  %v2744_v59 = vld [vmem:[#allocation5 + $0x36c] ss:$16 sps:$4 sm:$0xff]   ;;  %v2742_v62 = vld [vmem:[#allocation5 + $0x368] ss:$16 sps:$4 sm:$0xff]  }
  0xa8   :  { %1401 = vmatprep.subr.bf16.mxu0 %v2678_v61  ;;  %v2825_v61 = vld [vmem:[#allocation7 + $0x54] ss:$8 sps:$4 sm:$0xff]  }
  0xaa   :  { %1488 = vmatpush1.bf16.msra.mxu1 %v2679_v0  ;;  %v2823_v0 = vld [vmem:[#allocation7 + $0x50] ss:$8 sps:$4 sm:$0xff]  }
  0xab   :  { %1402 = vmatpush1.bf16.msra.mxu0 %v2676_v63  ;;  %1489 = vmatprep.subr.bf16.mxu1 %v2687_v2  ;;  %v2747_v63 = vld [vmem:[#allocation5 + $0x38c] ss:$16 sps:$4 sm:$0xff]   ;;  %v2745_v2 = vld [vmem:[#allocation5 + $0x388] ss:$16 sps:$4 sm:$0xff]  }
  0xac   :  { %1403 = vmatprep.subr.bf16.mxu0 %v2684_v1  ;;  %v2828_v1 = vld [vmem:[#allocation7 + $0x64] ss:$8 sps:$4 sm:$0xff]  }
  0xae   :  { %1490 = vmatpush1.bf16.msra.mxu1 %v2685_v4  ;;  %v2826_v4 = vld [vmem:[#allocation7 + $0x60] ss:$8 sps:$4 sm:$0xff]  }
  0xaf   :  { %1404 = vmatpush1.bf16.msra.mxu0 %v2682_v3  ;;  %1491 = vmatprep.subr.bf16.mxu1 %v2693_v6  ;;  %v2750_v3 = vld [vmem:[#allocation5 + $0x3ac] ss:$16 sps:$4 sm:$0xff]   ;;  %v2748_v6 = vld [vmem:[#allocation5 + $0x3a8] ss:$16 sps:$4 sm:$0xff]  }
  0xb0   :  { %1405 = vmatprep.subr.bf16.mxu0 %v2690_v5  ;;  %v2831_v5 = vld [vmem:[#allocation7 + $0x74] ss:$8 sps:$4 sm:$0xff]  }
  0xb2   :  { %1492 = vmatpush1.bf16.msra.mxu1 %v2691_v8  ;;  %v2829_v8 = vld [vmem:[#allocation7 + $0x70] ss:$8 sps:$4 sm:$0xff]  }
  0xb3   :  { %1406 = vmatpush1.bf16.msra.mxu0 %v2688_v7  ;;  %1493 = vmatprep.subr.bf16.mxu1 %v2699_v10  ;;  %v2753_v7 = vld [vmem:[#allocation5 + $0x3cc] ss:$16 sps:$4 sm:$0xff]   ;;  %v2751_v10 = vld [vmem:[#allocation5 + $0x3c8] ss:$16 sps:$4 sm:$0xff]  }
  0xb4   :  { %1407 = vmatprep.subr.bf16.mxu0 %v2696_v9  ;;  %v2834_v9 = vld [vmem:[#allocation7 + $0x84] ss:$8 sps:$4 sm:$0xff]  }
  0xb6   :  { %1494 = vmatpush1.bf16.msra.mxu1 %v2697_v12  ;;  %v2832_v12 = vld [vmem:[#allocation7 + $0x80] ss:$8 sps:$4 sm:$0xff]  }
  0xb7   :  { %1408 = vmatpush1.bf16.msra.mxu0 %v2694_v11  ;;  %1495 = vmatprep.subr.bf16.mxu1 %v2705_v15  ;;  %v2756_v11 = vld [vmem:[#allocation5 + $0x3ec] ss:$16 sps:$4 sm:$0xff]   ;;  %v2754_v15 = vld [vmem:[#allocation5 + $0x3e8] ss:$16 sps:$4 sm:$0xff]  }
  0xb8   :  { %1409 = vmatprep.subr.bf16.mxu0 %v2702_v14  ;;  %v2837_v14 = vld [vmem:[#allocation7 + $0x94] ss:$8 sps:$4 sm:$0xff]  }
  0xba   :  { %1496 = vmatpush1.bf16.msra.mxu1 %v2703_v18  ;;  %v2835_v18 = vld [vmem:[#allocation7 + $0x90] ss:$8 sps:$4 sm:$0xff]  }
  0xbb   :  { %1410 = vmatpush1.bf16.msra.mxu0 %v2700_v17  ;;  %1508 = vmatprep.subr.bf16.mxu1 %v2708_v21  ;;  %v2759_v17 = vld [vmem:[#allocation5 + $0x40c] ss:$16 sps:$4 sm:$0xff]  }
  0xbc   :  { %1422 = vmatprep.subr.bf16.mxu0 %v2714_v22  ;;  %v2762_v21 = vld [vmem:[#allocation5 + $0x42c] ss:$16 sps:$4 sm:$0xff]   ;;  %v2838_v22 = vld [vmem:[#allocation7 + $0xa0] ss:$8 sps:$4 sm:$0xff]  }
  0xbd   :  { %1498 = vmatmul.mubr.bf16.vlgmr.msra.gmra.mrb[4].mxu1 %v3077_v13  ;;  %v2723_v13 = vld [vmem:[#allocation5 + $0x28c] ss:$16 sps:$4 sm:$0xff]  }
  0xbe   :  { %1412 = vmatmul.mubr.bf16.vlgmr.msra.gmra.mrb[0].mxu0 %v3087_v23  ;;  %1509 = vmatpush1.bf16.msra.mxu1 %v2706_v24  ;;  %v2843_v24 = vld [vmem:[#allocation7 + $0xb4] ss:$8 sps:$4 sm:$0xff]  }
  0xbf   :  { %1423 = vmatpush1.bf16.msra.mxu0 %v2712_v25  ;;  %1510 = vmatprep.subr.bf16.mxu1 %v2711_v26  ;;  %v2760_v25 = vld [vmem:[#allocation5 + $0x428] ss:$16 sps:$4 sm:$0xff]   ;;  %v2765_v26 = vld [vmem:[#allocation5 + $0x44c] ss:$16 sps:$4 sm:$0xff]  }
  0xc0   :  { %1454 = vmatprep.mubr.bf16.mxu0 %v2991_v29  ;;  %1540 = vmatprep.mubr.bf16.mxu1 %v3073_v56  ;;  %v2727_v56 = vld [vmem:[#allocation5 + $0x2c8] ss:$16 sps:$4 sm:$0xff]  }
  0xc1   :  { %2053 = vmatprep.subr.bf16.mxu0 %v2810_v42  ;;  %v2849_v42 = vld [vmem:[#allocation7 + $0xd4] ss:$8 sps:$4 sm:$0xff]  }
  0xc2   :  { %1511 = vmatpush1.bf16.msra.mxu1 %v2709_v27  ;;  %v2841_v27 = vld [vmem:[#allocation7 + $0xb0] ss:$8 sps:$4 sm:$0xff]  }
  0xc3   :  { %1512 = vmatprep.subr.bf16.mxu1 %v2717_v28  ;;  %v2846_v28 = vld [vmem:[#allocation7 + $0xc4] ss:$8 sps:$4 sm:$0xff]  }
  0xc6   :  { %1513 = vmatpush1.bf16.msra.mxu1 %v2715_v30  ;;  %v2763_v30 = vld [vmem:[#allocation5 + $0x448] ss:$16 sps:$4 sm:$0xff]  }
  0xc7   :  { %1514 = vmatprep.subr.bf16.mxu1 %v2720_v33  ;;  %v2766_v33 = vld [vmem:[#allocation5 + $0x468] ss:$16 sps:$4 sm:$0xff]  }
  0xca   :  { %2395 = vmatmul.mubr.msk.bf16.vlgmr.msra.gmra.mrb[0].mxu0 %vm1289_vm0, %v3093_v35  ;;  %1515 = vmatpush1.bf16.msra.mxu1 %v2718_v34  ;;  %v2774_v34 = vld [vmem:[#allocation5 + $0x4ac] ss:$16 sps:$4 sm:$0xff]  }
  0xcb   :  { %1516 = vmatprep.subr.bf16.mxu1 %v2723_v13  ;;  %2054 = vmatpush1.bf16.msra.mxu0 %v2808_v41  ;;  %v2772_v13 = vld [vmem:[#allocation5 + $0x4a8] ss:$16 sps:$4 sm:$0xff]   ;;  %v2786_v41 = vld [vmem:[#allocation5 + $0x52c] ss:$16 sps:$4 sm:$0xff]  }
  0xcc   :  { %2055 = vmatprep.subr.bf16.mxu0 %v2813_v43  ;;  %v2847_v43 = vld [vmem:[#allocation7 + $0xd0] ss:$8 sps:$4 sm:$0xff]  }
  0xce   :  { %1517 = vmatpush1.bf16.msra.mxu1 %v2721_v36  ;;  %v2777_v36 = vld [vmem:[#allocation5 + $0x4cc] ss:$16 sps:$4 sm:$0xff]  }
  0xcf   :  { %1518 = vmatprep.subr.bf16.mxu1 %v2726_v37  ;;  %2056 = vmatpush1.bf16.msra.mxu0 %v2811_v47  ;;  %v2775_v37 = vld [vmem:[#allocation5 + $0x4c8] ss:$16 sps:$4 sm:$0xff]   ;;  %v2852_v47 = vld [vmem:[#allocation7 + $0xe4] ss:$8 sps:$4 sm:$0xff]  }
  0xd0   :  { %2057 = vmatprep.subr.bf16.mxu0 %v2816_v48  ;;  %v2850_v48 = vld [vmem:[#allocation7 + $0xe0] ss:$8 sps:$4 sm:$0xff]  }
  0xd2   :  { %1519 = vmatpush1.bf16.msra.mxu1 %v2724_v38  ;;  %v2780_v38 = vld [vmem:[#allocation5 + $0x4ec] ss:$16 sps:$4 sm:$0xff]  }
  0xd3   :  { %1520 = vmatprep.subr.bf16.mxu1 %v2729_v39  ;;  %2058 = vmatpush1.bf16.msra.mxu0 %v2814_v51  ;;  %v2778_v39 = vld [vmem:[#allocation5 + $0x4e8] ss:$16 sps:$4 sm:$0xff]   ;;  %v2855_v51 = vld [vmem:[#allocation7 + $0xf4] ss:$8 sps:$4 sm:$0xff]  }
  0xd4   :  { %2059 = vmatprep.subr.bf16.mxu0 %v2819_v53  ;;  %v2790_v53 = vld [vmem:[#allocation5 + $0x568] ss:$16 sps:$4 sm:$0xff]  }
  0xd6   :  { %1521 = vmatpush1.bf16.msra.mxu1 %v2727_v56  ;;  %v2783_v56 = vld [vmem:[#allocation5 + $0x50c] ss:$16 sps:$4 sm:$0xff]  }
  0xd7   :  { %1522 = vmatprep.subr.bf16.mxu1 %v2732_v40  ;;  %2060 = vmatpush1.bf16.msra.mxu0 %v2817_v55  ;;  %v2781_v40 = vld [vmem:[#allocation5 + $0x508] ss:$16 sps:$4 sm:$0xff]   ;;  %v2858_v55 = vld [vmem:[#allocation7 + $0x104] ss:$8 sps:$4 sm:$0xff]  }
  0xd8   :  { %2061 = vmatprep.subr.bf16.mxu0 %v2822_v57  ;;  %v2793_v57 = vld [vmem:[#allocation5 + $0x588] ss:$16 sps:$4 sm:$0xff]  }
  0xda   :  { %1523 = vmatpush1.bf16.msra.mxu1 %v2730_v44  ;;  %v2784_v44 = vld [vmem:[#allocation5 + $0x528] ss:$16 sps:$4 sm:$0xff]  }
  0xdb   :  { %1524 = vmatprep.subr.bf16.mxu1 %v2735_v46  ;;  %2062 = vmatpush1.bf16.msra.mxu0 %v2820_v60  ;;  %v2789_v46 = vld [vmem:[#allocation5 + $0x54c] ss:$16 sps:$4 sm:$0xff]  }
  0xdc   :  { %2063 = vmatprep.subr.bf16.mxu0 %v2825_v61  ;;  %v2801_v60 = vld [vmem:[#allocation5 + $0x5cc] ss:$16 sps:$4 sm:$0xff]   ;;  %v2799_v61 = vld [vmem:[#allocation5 + $0x5c8] ss:$16 sps:$4 sm:$0xff]  }
  0xde   :  { %1525 = vmatpush1.bf16.msra.mxu1 %v2733_v49  ;;  %v2787_v49 = vld [vmem:[#allocation5 + $0x548] ss:$16 sps:$4 sm:$0xff]  }
  0xdf   :  { %1526 = vmatprep.subr.bf16.mxu1 %v2738_v50  ;;  %2064 = vmatpush1.bf16.msra.mxu0 %v2823_v0  ;;  %v2792_v50 = vld [vmem:[#allocation5 + $0x56c] ss:$16 sps:$4 sm:$0xff]  }
  0xe0   :  { %2065 = vmatprep.subr.bf16.mxu0 %v2828_v1  ;;  %v2807_v0 = vld [vmem:[#allocation5 + $0x60c] ss:$16 sps:$4 sm:$0xff]   ;;  %v2805_v1 = vld [vmem:[#allocation5 + $0x608] ss:$16 sps:$4 sm:$0xff]  }
  0xe2   :  { %1527 = vmatpush1.bf16.msra.mxu1 %v2736_v52  ;;  %v2853_v52 = vld [vmem:[#allocation7 + $0xf0] ss:$8 sps:$4 sm:$0xff]  }
  0xe3   :  { %1528 = vmatprep.subr.bf16.mxu1 %v2741_v54  ;;  %2066 = vmatpush1.bf16.msra.mxu0 %v2826_v4  ;;  %v2795_v54 = vld [vmem:[#allocation5 + $0x58c] ss:$16 sps:$4 sm:$0xff]  }
  0xe4   :  { %2067 = vmatprep.subr.bf16.mxu0 %v2831_v5 }
  0xe6   :  { %1529 = vmatpush1.bf16.msra.mxu1 %v2739_v58  ;;  %v2798_v58 = vld [vmem:[#allocation5 + $0x5ac] ss:$16 sps:$4 sm:$0xff]  }
  0xe7   :  { %1530 = vmatprep.subr.bf16.mxu1 %v2744_v59  ;;  %2068 = vmatpush1.bf16.msra.mxu0 %v2829_v8  ;;  %v2796_v59 = vld [vmem:[#allocation5 + $0x5a8] ss:$16 sps:$4 sm:$0xff]  }
  0xe8   :  { %2069 = vmatprep.subr.bf16.mxu0 %v2834_v9 }
  0xea   :  { %1531 = vmatpush1.bf16.msra.mxu1 %v2742_v62  ;;  %v2804_v62 = vld [vmem:[#allocation5 + $0x5ec] ss:$16 sps:$4 sm:$0xff]  }
  0xeb   :  { %1532 = vmatprep.subr.bf16.mxu1 %v2747_v63  ;;  %2070 = vmatpush1.bf16.msra.mxu0 %v2832_v12  ;;  %v2802_v63 = vld [vmem:[#allocation5 + $0x5e8] ss:$16 sps:$4 sm:$0xff]  }
  0xec   :  { %2071 = vmatprep.subr.bf16.mxu0 %v2837_v14 }
  0xee   :  { %1533 = vmatpush1.bf16.msra.mxu1 %v2745_v2 }
  0xef   :  { %1534 = vmatprep.subr.bf16.mxu1 %v2750_v3  ;;  %2072 = vmatpush1.bf16.msra.mxu0 %v2835_v18 }
  0xf0   :  { %2073 = vmatprep.subr.bf16.mxu0 %v2840_v19 }
  0xf2   :  { %1535 = vmatpush1.bf16.msra.mxu1 %v2748_v6  ;;  %v289_v6 = vlaneseq }
  0xf3   :  { %1536 = vmatprep.subr.bf16.mxu1 %v2753_v7  ;;  %2074 = vmatpush1.bf16.msra.mxu0 %v2838_v22 }
  0xf4   :  { %2075 = vmatprep.subr.bf16.mxu0 %v2843_v24  ;;  %v3103_v7 = vshrl.u32 %v289_v6, 7 }
  0xf6   :  { %1537 = vmatpush1.bf16.msra.mxu1 %v2751_v10  ;;  %v3106_v8 = vsub.s32 0, %v3103_v7 }
  0xf7   :  { %1538 = vmatprep.subr.bf16.mxu1 %v2756_v11  ;;  %2076 = vmatpush1.bf16.msra.mxu0 %v2841_v27 }
  0xf8   :  { %2077 = vmatprep.subr.bf16.mxu0 %v2846_v28 }
  0xfa   :  { %1539 = vmatpush1.bf16.msra.mxu1 %v2754_v15 }
  0xfb   :  { %1551 = vmatprep.subr.bf16.mxu1 %v2759_v17  ;;  %2078 = vmatpush1.bf16.msra.mxu0 %v2844_v32 }
  0xfc   :  { %2079 = vmatprep.subr.bf16.mxu0 %v2849_v42  ;;  %v2873_v42 = vld [vmem:[#allocation7 + $0x154] ss:$8 sps:$4 sm:$0xff]  }
  0xfd   :  { %1541 = vmatmul.mubr.bf16.vlgmr.msra.gmra.mrb[4].mxu1 %v3079_v16  ;;  %v2771_v16 = vld [vmem:[#allocation5 + $0x48c] ss:$16 sps:$4 sm:$0xff]  }
  0xfe   :  { %1552 = vmatpush1.bf16.msra.mxu1 %v2757_v20  ;;  %1583 = vmatprep.mubr.bf16.mxu1 %v3084_v45  ;;  %v2769_v45 = vld [vmem:[#allocation5 + $0x488] ss:$16 sps:$4 sm:$0xff]  }
  0xff   :  { %1553 = vmatprep.subr.bf16.mxu1 %v2762_v21  ;;  %2080 = vmatpush1.bf16.msra.mxu0 %v2847_v43  ;;  %v2871_v43 = vld [vmem:[#allocation7 + $0x150] ss:$8 sps:$4 sm:$0xff]  }
 0x100   :  { %2081 = vmatprep.subr.bf16.mxu0 %v2852_v47  ;;  %v2879_v47 = vld [vmem:[#allocation7 + $0x174] ss:$8 sps:$4 sm:$0xff]  }
 0x102   :  { %1554 = vmatpush1.bf16.msra.mxu1 %v2760_v25 }
 0x103   :  { %1555 = vmatprep.subr.bf16.mxu1 %v2765_v26  ;;  %2082 = vmatpush1.bf16.msra.mxu0 %v2850_v48  ;;  %v2877_v48 = vld [vmem:[#allocation7 + $0x170] ss:$8 sps:$4 sm:$0xff]  }
 0x104   :  { %2083 = vmatprep.subr.bf16.mxu0 %v2855_v51  ;;  %v2885_v51 = vld [vmem:[#allocation7 + $0x194] ss:$8 sps:$4 sm:$0xff]  }
 0x106   :  { %1556 = vmatpush1.bf16.msra.mxu1 %v2763_v30 }
 0x107   :  { %1557 = vmatprep.subr.bf16.mxu1 %v2768_v31  ;;  %2084 = vmatpush1.bf16.msra.mxu0 %v2853_v52  ;;  %v2883_v52 = vld [vmem:[#allocation7 + $0x190] ss:$8 sps:$4 sm:$0xff]  }
 0x108   :  { %2096 = vmatprep.subr.bf16.mxu0 %v2858_v55  ;;  %v2891_v55 = vld [vmem:[#allocation7 + $0x1b4] ss:$8 sps:$4 sm:$0xff]  }
 0x10a   :  { %1558 = vmatpush1.bf16.msra.mxu1 %v2766_v33 }
 0x10b   :  { %1559 = vmatprep.subr.bf16.mxu1 %v2771_v16 }
 0x10e   :  { %1560 = vmatpush1.bf16.msra.mxu1 %v2769_v45 }
 0x10f   :  { %1561 = vmatprep.subr.bf16.mxu1 %v2774_v34  ;;  %v2856_v34 = vld [vmem:[#allocation7 + $0x100] ss:$8 sps:$4 sm:$0xff]  }
 0x112   :  { %1562 = vmatpush1.bf16.msra.mxu1 %v2772_v13  ;;  %v2861_v13 = vld [vmem:[#allocation7 + $0x114] ss:$8 sps:$4 sm:$0xff]  }
 0x113   :  { %1563 = vmatprep.subr.bf16.mxu1 %v2777_v36  ;;  %v2859_v36 = vld [vmem:[#allocation7 + $0x110] ss:$8 sps:$4 sm:$0xff]  }
 0x116   :  { %1564 = vmatpush1.bf16.msra.mxu1 %v2775_v37  ;;  %v2864_v37 = vld [vmem:[#allocation7 + $0x124] ss:$8 sps:$4 sm:$0xff]  }
 0x117   :  { %1565 = vmatprep.subr.bf16.mxu1 %v2780_v38  ;;  %v2862_v38 = vld [vmem:[#allocation7 + $0x120] ss:$8 sps:$4 sm:$0xff]  }
 0x11a   :  { %1566 = vmatpush1.bf16.msra.mxu1 %v2778_v39  ;;  %v2867_v39 = vld [vmem:[#allocation7 + $0x134] ss:$8 sps:$4 sm:$0xff]  }
 0x11b   :  { %1567 = vmatprep.subr.bf16.mxu1 %v2783_v56  ;;  %v2865_v56 = vld [vmem:[#allocation7 + $0x130] ss:$8 sps:$4 sm:$0xff]  }
 0x11e   :  { %1568 = vmatpush1.bf16.msra.mxu1 %v2781_v40  ;;  %v2870_v40 = vld [vmem:[#allocation7 + $0x144] ss:$8 sps:$4 sm:$0xff]  }
 0x11f   :  { %1569 = vmatprep.subr.bf16.mxu1 %v2786_v41  ;;  %v2868_v41 = vld [vmem:[#allocation7 + $0x140] ss:$8 sps:$4 sm:$0xff]  }
 0x122   :  { %1570 = vmatpush1.bf16.msra.mxu1 %v2784_v44  ;;  %v2876_v44 = vld [vmem:[#allocation7 + $0x164] ss:$8 sps:$4 sm:$0xff]  }
 0x123   :  { %1571 = vmatprep.subr.bf16.mxu1 %v2789_v46  ;;  %v2874_v46 = vld [vmem:[#allocation7 + $0x160] ss:$8 sps:$4 sm:$0xff]  }
 0x126   :  { %1572 = vmatpush1.bf16.msra.mxu1 %v2787_v49  ;;  %v2882_v49 = vld [vmem:[#allocation7 + $0x184] ss:$8 sps:$4 sm:$0xff]  }
 0x127   :  { %1573 = vmatprep.subr.bf16.mxu1 %v2792_v50  ;;  %v2880_v50 = vld [vmem:[#allocation7 + $0x180] ss:$8 sps:$4 sm:$0xff]  }
 0x12a   :  { %1574 = vmatpush1.bf16.msra.mxu1 %v2790_v53  ;;  %v2888_v53 = vld [vmem:[#allocation7 + $0x1a4] ss:$8 sps:$4 sm:$0xff]  }
 0x12b   :  { %1575 = vmatprep.subr.bf16.mxu1 %v2795_v54  ;;  %v2886_v54 = vld [vmem:[#allocation7 + $0x1a0] ss:$8 sps:$4 sm:$0xff]  }
 0x12e   :  { %1576 = vmatpush1.bf16.msra.mxu1 %v2793_v57  ;;  %v2889_v57 = vld [vmem:[#allocation7 + $0x1b0] ss:$8 sps:$4 sm:$0xff]  }
 0x12f   :  { %1577 = vmatprep.subr.bf16.mxu1 %v2798_v58  ;;  %v2894_v58 = vld [vmem:[#allocation7 + $0x1c4] ss:$8 sps:$4 sm:$0xff]  }
 0x132   :  { %1578 = vmatpush1.bf16.msra.mxu1 %v2796_v59  ;;  %v2892_v59 = vld [vmem:[#allocation7 + $0x1c0] ss:$8 sps:$4 sm:$0xff]  }
 0x133   :  { %1579 = vmatprep.subr.bf16.mxu1 %v2801_v60  ;;  %v2897_v60 = vld [vmem:[#allocation7 + $0x1d4] ss:$8 sps:$4 sm:$0xff]  }
 0x136   :  { %1580 = vmatpush1.bf16.msra.mxu1 %v2799_v61  ;;  %v2895_v61 = vld [vmem:[#allocation7 + $0x1d0] ss:$8 sps:$4 sm:$0xff]  }
 0x137   :  { %1581 = vmatprep.subr.bf16.mxu1 %v2804_v62  ;;  %v2900_v62 = vld [vmem:[#allocation7 + $0x1e4] ss:$8 sps:$4 sm:$0xff]  }
 0x13a   :  { %1582 = vmatpush1.bf16.msra.mxu1 %v2802_v63  ;;  %v2898_v63 = vld [vmem:[#allocation7 + $0x1e0] ss:$8 sps:$4 sm:$0xff]  }
 0x13b   :  { %1594 = vmatprep.subr.bf16.mxu1 %v2807_v0  ;;  %v2903_v0 = vld [vmem:[#allocation7 + $0x1f4] ss:$8 sps:$4 sm:$0xff]  }
 0x13d   :  { %1584 = vmatmul.mubr.bf16.vlgmr.msra.gmra.mrb[4].mxu1 %v3087_v23  ;;  %v3111_v23 = vld [vmem:[%s3142_s2] sm:$0xf] }
 0x13e   :  { %1595 = vmatpush1.bf16.msra.mxu1 %v2805_v1  ;;  %1626 = vmatprep.mubr.bf16.mxu1 %v2991_v29  ;;  %v3114_v29 = vsub.s32 1, %v3103_v7  ;;  %v2901_v1 = vld [vmem:[#allocation7 + $0x1f0] ss:$8 sps:$4 sm:$0xff]  }
 0x140   :  { %v296_v9 = vrot.slane %v3111_v23, %v3114_v29 }
 0x149   :  { %2396 = vmatmul.mubr.msk.bf16.vlgmr.msra.gmra.mrb[4].mxu1 %vm1289_vm0, %v3093_v35  ;;  %v292_v35 = vrot.slane %v3111_v23, %v3106_v8 }
 0x150   :  { %v1327_v2 = vpop.f32.mrb[0].mxu1 }
 0x151   :  { %v1329_v3 = vpop.f32.mrb[1].mxu1  ;;  %v1328_v10 = vadd.f32 %v1327_v2, %v292_v35  ;;  %v299_v2 = vsub.s32 2, %v3103_v7 }
 0x152   :  { %v1331_v4 = vpop.f32.mrb[2].mxu1  ;;  %v1330_v11 = vadd.f32 %v1329_v3, %v296_v9  ;;  %v303_v3 = vsub.s32 3, %v3103_v7 }
 0x153   :  { %v1333_v5 = vpop.f32.mrb[3].mxu1  ;;  %v1332_v14 = vadd.f32 %v1331_v4, %v292_v35  ;;  %v300_v4 = vrot.slane %v3111_v23, %v299_v2 }
 0x154   :  { %v1334_v18 = vadd.f32 %v1333_v5, %v296_v9  ;;  %v304_v5 = vrot.slane %v3111_v23, %v303_v3  ;;  %v1721_v23 = vld [vmem:[%s3144_s4] sm:$0x3] }
 0x19d   :  { %v1456_v12 = vpop.f32.mrb[0].mxu0 }
 0x19e   :  { %v2465_v15 = vadd.f32 %v1456_v12, %v1328_v10  ;;  %v1458_v17 = vpop.f32.mrb[1].mxu0 }
 0x19f   :  { %v2467_v19 = vadd.f32 %v1458_v17, %v1330_v11  ;;  %v1460_v20 = vpop.f32.mrb[2].mxu0 }
 0x1a0   :  { %v1637_v21 = vmul.f32 0.2, %v2465_v15  ;;  %v2469_v22 = vadd.f32 %v1460_v20, %v1332_v14  ;;  %v1462_v24 = vpop.f32.mrb[3].mxu0 }
 0x1a1   :  { %v1638_v25 = vmul.f32 0.2, %v2467_v19  ;;  %v2471_v26 = vadd.f32 %v1462_v24, %v1334_v18 }
 0x1a2   :  { %v1641_v27 = vmul.f32 0.2, %v2469_v22  ;;  %v1645_v30 = vmax.f32 %v2465_v15, %v1637_v21 }
 0x1a3   :  { %v1642_v28 = vmul.f32 0.2, %v2471_v26  ;;  %v1646_v32 = vmax.f32 %v2467_v19, %v1638_v25 }
 0x1a4   :  { %v1649_v31 = vmax.f32 %v2469_v22, %v1641_v27  ;;  %v1726_v27 = vrot.slane %v1721_v23, %v3106_v8 }
 0x1a5   :  { %v1650_v33 = vmax.f32 %v2471_v26, %v1642_v28  ;;  %v1730_v28 = vrot.slane %v1721_v23, %v3114_v29 }
 0x1a6   :  { %v1653_v16 = vpack.c.bf16 %v1649_v31, %v1645_v30  ;;  %v2147_v31 = vld [vmem:[%s3145_s5] sm:$0x3] }
 0x1a7   :  { %v1654_v45 = vpack.c.bf16 %v1650_v33, %v1646_v32 }
 0x1a9   :  { %2085 = vmatprep.mubr.bf16.mxu0 %v1654_v45 }
 0x1aa   :  { %2086 = vmatmul.mubr.bf16.vlgmr.msra.gmra.mrb[4].mxu0 %v1653_v16 }
 0x1ab   :  { %2097 = vmatpush1.bf16.msra.mxu0 %v2856_v34 }
 0x1ac   :  { %2098 = vmatprep.subr.bf16.mxu0 %v2861_v13 }
 0x1af   :  { %2099 = vmatpush1.bf16.msra.mxu0 %v2859_v36 }
 0x1b0   :  { %2100 = vmatprep.subr.bf16.mxu0 %v2864_v37  ;;  %v2152_v37 = vrot.slane %v2147_v31, %v3106_v8 }
 0x1b3   :  { %2101 = vmatpush1.bf16.msra.mxu0 %v2862_v38 }
 0x1b4   :  { %2102 = vmatprep.subr.bf16.mxu0 %v2867_v39 }
 0x1b7   :  { %2103 = vmatpush1.bf16.msra.mxu0 %v2865_v56  ;;  %v2156_v56 = vrot.slane %v2147_v31, %v3114_v29 }
 0x1b8   :  { %2104 = vmatprep.subr.bf16.mxu0 %v2870_v40 }
 0x1bb   :  { %2105 = vmatpush1.bf16.msra.mxu0 %v2868_v41 }
 0x1bc   :  { %2106 = vmatprep.subr.bf16.mxu0 %v2873_v42 }
 0x1bf   :  { %2107 = vmatpush1.bf16.msra.mxu0 %v2871_v43 }
 0x1c0   :  { %2108 = vmatprep.subr.bf16.mxu0 %v2876_v44 }
 0x1c3   :  { %2109 = vmatpush1.bf16.msra.mxu0 %v2874_v46 }
 0x1c4   :  { %2110 = vmatprep.subr.bf16.mxu0 %v2879_v47 }
 0x1c7   :  { %2111 = vmatpush1.bf16.msra.mxu0 %v2877_v48 }
 0x1c8   :  { %2112 = vmatprep.subr.bf16.mxu0 %v2882_v49 }
 0x1cb   :  { %2113 = vmatpush1.bf16.msra.mxu0 %v2880_v50 }
 0x1cc   :  { %2114 = vmatprep.subr.bf16.mxu0 %v2885_v51 }
 0x1cf   :  { %2115 = vmatpush1.bf16.msra.mxu0 %v2883_v52 }
 0x1d0   :  { %2116 = vmatprep.subr.bf16.mxu0 %v2888_v53  ;;  %v2461_v53 = vld [vmem:[#allocation2] ss:$0 sm:$0xff] }
 0x1d3   :  { %2117 = vmatpush1.bf16.msra.mxu0 %v2886_v54 }
 0x1d4   :  { %2118 = vmatprep.subr.bf16.mxu0 %v2891_v55 }
 0x1d7   :  { %2119 = vmatpush1.bf16.msra.mxu0 %v2889_v57 }
 0x1d8   :  { %2120 = vmatprep.subr.bf16.mxu0 %v2894_v58 }
 0x1db   :  { %2121 = vmatpush1.bf16.msra.mxu0 %v2892_v59 }
 0x1dc   :  { %2122 = vmatprep.subr.bf16.mxu0 %v2897_v60 }
 0x1df   :  { %2123 = vmatpush1.bf16.msra.mxu0 %v2895_v61 }
 0x1e0   :  { %2124 = vmatprep.subr.bf16.mxu0 %v2900_v62 }
 0x1e3   :  { %2125 = vmatpush1.bf16.msra.mxu0 %v2898_v63 }
 0x1e4   :  { %2126 = vmatprep.subr.bf16.mxu0 %v2903_v0 }
 0x1e7   :  { %2127 = vmatpush1.bf16.msra.mxu0 %v2901_v1 }
 0x21c   :  { %v1628_v6 = vpop.f32.mrb[4].mxu1 }
 0x21d   :  { %v2472_v35 = vadd.f32 %v1628_v6, %v300_v4  ;;  %v1630_v9 = vpop.f32.mrb[5].mxu1 }
 0x21e   :  { %v2473_v10 = vadd.f32 %v1630_v9, %v304_v5  ;;  %v1632_v11 = vpop.f32.mrb[6].mxu1 }
 0x21f   :  { %v1639_v12 = vmul.f32 0.2, %v2472_v35  ;;  %v2474_v14 = vadd.f32 %v1632_v11, %v300_v4  ;;  %v1634_v15 = vpop.f32.mrb[7].mxu1 }
 0x220   :  { %v1640_v17 = vmul.f32 0.2, %v2473_v10  ;;  %v2475_v18 = vadd.f32 %v1634_v15, %v304_v5 }
 0x221   :  { %v1643_v19 = vmul.f32 0.2, %v2474_v14  ;;  %v1647_v21 = vmax.f32 %v2472_v35, %v1639_v12 }
 0x222   :  { %v1644_v20 = vmul.f32 0.2, %v2475_v18  ;;  %v1648_v24 = vmax.f32 %v2473_v10, %v1640_v17 }
 0x223   :  { %v1651_v22 = vmax.f32 %v2474_v14, %v1643_v19 }
 0x224   :  { %v1652_v7 = vmax.f32 %v2475_v18, %v1644_v20 }
 0x225   :  { %v1655_v25 = vpack.c.bf16 %v1651_v22, %v1647_v21 }
 0x226   :  { %v1656_v26 = vpack.c.bf16 %v1652_v7, %v1648_v24 }
 0x228   :  { %2128 = vmatprep.mubr.bf16.mxu0 %v1656_v26 }
 0x229   :  { %2129 = vmatmul.mubr.bf16.vlgmr.msra.gmra.mrb[4].mxu0 %v1655_v25 }
 0x2fc   :  { %v2130_v30 = vpop.f32.mrb[4].mxu0 }
 0x2fd   :  { %v2476_v32 = vadd.f32 %v2130_v30, %v1726_v27  ;;  %v2132_v33 = vpop.f32.mrb[5].mxu0 }
 0x2fe   :  { %v2477_v16 = vadd.f32 %v2132_v33, %v1730_v28  ;;  %v2134_v45 = vpop.f32.mrb[6].mxu0 }
 0x2ff   :  { %v2139_v34 = vmul.f32 0.2, %v2476_v32  ;;  %v2478_v13 = vadd.f32 %v2134_v45, %v1726_v27  ;;  %v2136_v36 = vpop.f32.mrb[7].mxu0 }
 0x300   :  { %v2140_v38 = vmul.f32 0.2, %v2477_v16  ;;  %v2479_v39 = vadd.f32 %v2136_v36, %v1730_v28 }
 0x301   :  { %v2143_v40 = vmax.f32 %v2476_v32, %v2139_v34  ;;  %v2141_v41 = vmul.f32 0.2, %v2478_v13 }
 0x302   :  { %v2144_v42 = vmax.f32 %v2477_v16, %v2140_v38  ;;  %v2142_v43 = vmul.f32 0.2, %v2479_v39 }
 0x303   :  { %v2145_v44 = vmax.f32 %v2478_v13, %v2141_v41  ;;  %v2159_v46 = vmul.f32 %v2152_v37, %v2143_v40 }
 0x304   :  { %v2146_v47 = vmax.f32 %v2479_v39, %v2142_v43  ;;  %v2160_v48 = vmul.f32 %v2156_v56, %v2144_v42 }
 0x305   :  { %v2161_v49 = vmul.f32 %v2152_v37, %v2145_v44 }
 0x306   :  { %v2163_v50 = vadd.f32 %v2160_v48, %v2159_v46  ;;  %v2162_v51 = vmul.f32 %v2156_v56, %v2146_v47 }
 0x308   :  { %2164 = vadd.xlane.f32.xlu0 %v2163_v50  ;;  %v2166_v52 = vadd.f32 %v2162_v51, %v2161_v49 }
 0x30c   :  { %2167 = vadd.xlane.f32.xlu0 %v2166_v52 }
 0x395   :  { %v2165_v8 = vpop.xlane.xlu0 %2164 }
 0x396   :  { %v2176_v54 = vadd.f32 %v2461_v53, %v2165_v8 }
 0x398   :  { %v2462_v55 = vmul.f32 -1.442695, %v2176_v54 }
 0x399   :  { %v2168_v57 = vpop.xlane.xlu0 %2167 }
 0x39a   :  { %2904 = vpow2.f32 %v2462_v55  ;;  %v2177_v29 = vadd.f32 %v2461_v53, %v2168_v57 }
 0x39c   :  { %v2463_v58 = vmul.f32 -1.442695, %v2177_v29 }
 0x39e   :  { %2906 = vpow2.f32 %v2463_v58 }
 0x3a4   :  { %v2905_v59 = vpop.eup %2904 }
 0x3a5   :  { %v2184_v60 = vadd.f32 1.0, %v2905_v59 }
 0x3a7   :  { %2908 = vrcp.f32 %v2184_v60 }
 0x3a8   :  { %v2907_v61 = vpop.eup %2906 }
 0x3a9   :  { %v2185_v62 = vadd.f32 1.0, %v2907_v61 }
 0x3ab   :  { %2910 = vrcp.f32 %v2185_v62 }
 0x3b1   :  { %v2909_v63 = vpop.eup %2908 }
 0x3b2   :  { %2191 = vst.msk [vmem:[%s3147_s7] sm:$0xff] %vm2190_vm1, %v2909_v63 }
 0x3b5   :  { %v2911_v0 = vpop.eup %2910 }
 0x3b6   :  { %2192 = vst.msk [vmem:[%s3147_s7 + $0x8] sm:$0xff] %vm2190_vm1, %v2911_v0 }
 0x3b7   :  { %2197 = vsyncpa [#allocation4], 1 }
 0x3b8   :  { %2198 = vsyncpa [#allocation6], 1 }

</bundles_post_ra>
